<compile_context>
chip_gen: v6e
topology: v6e:2x2x1
jax: 0.10.0
libtpu: 0.0.40
codegen_flags: <defaults>
</compile_context>

<pallas_src>
import functools

import jax
import jax.numpy as jnp
from jax.experimental import pallas as pl
from jax.experimental.pallas import tpu as pltpu

# ----------------------------- model dimensions -----------------------------
B, S, H = 2, 8, 32          # batch, sequence length, hidden size
NH, HD = 4, 8               # heads, head dim (NH * HD == H)
F = 64                      # FFN inner size
MAX_DIST = 7                # relative-distance clipping
MAX_TURNS = 4               # turn-position vocabulary
Z = B * NH                  # (batch, head) blocks
ZS = Z * S                  # flattened attention rows (= 64)
NEG = -1e9                  # additive mask value


# --------------------------------- kernel -----------------------------------
def _heads_to_rows(qkv2d, col0):
    """[B*S, 3H] slice at col0 (rows=(b,s), lanes=(h,d)) -> [Z*S, HD] rows=(b,h,s)."""
    blocks = [qkv2d[b * S:(b + 1) * S, col0 + h * HD: col0 + (h + 1) * HD]
              for b in range(B) for h in range(NH)]
    return jnp.concatenate(blocks, axis=0)


def _rows_to_heads(ctx_f):
    """[Z*S, HD] rows=(b,h,s) -> [B*S, NH*HD] rows=(b,s), lanes=(h,d)."""
    row_blocks = []
    for b in range(B):
        lane_blocks = [ctx_f[(b * NH + h) * S:(b * NH + h + 1) * S, :]
                       for h in range(NH)]
        row_blocks.append(jnp.concatenate(lane_blocks, axis=1))
    return jnp.concatenate(row_blocks, axis=0)


def _normalize(x, eps=1e-5):
    """LayerNorm without gamma/beta (those are folded into the next weight)."""
    mu = jnp.mean(x, axis=-1, keepdims=True)
    var = jnp.mean((x - mu) ** 2, axis=-1, keepdims=True)
    return (x - mu) * jax.lax.rsqrt(var + eps)


def _make_encoder_kernel(want_attn):
    """One pre-LN transformer encoder layer for the whole batch, single step."""

    def kernel(x_ref, bias_ref, wqkv_ref, bqkv_ref, wo_ref,
               w1_ref, b1_ref, w2_ref, b2_ref, *out_refs):
        out_ref = out_refs[0]

        x2d = x_ref[...]                                   # [16, 32] (x + tpe)

        # ---- pre-LN fused QKV: one [16,32] @ [32,96] matmul ------------------
        n1 = _normalize(x2d)
        qkv = jnp.dot(n1, wqkv_ref[...],
                      preferred_element_type=jnp.float32) + bqkv_ref[...]  # [16,96]

        # ---- head -> row relayout (static slices + concats, tiny) ----------
        qf = _heads_to_rows(qkv, 0)                        # [64, 8]
        kf = _heads_to_rows(qkv, H)                        # [64, 8]
        vf = _heads_to_rows(qkv, 2 * H)                    # [64, 8]

        # ---- block-diagonal attention: two full-width MXU matmuls ----------
        scale = 1.0 / (HD ** 0.5)
        s = jnp.einsum('qd,kd->qk', qf, kf,
                       preferred_element_type=jnp.float32) * scale
        s = s + bias_ref[...]                              # [64, 64] (rpe+mask, -1e9 off-block)

        m = jnp.max(s, axis=-1, keepdims=True)
        e = jnp.exp(s - m)
        denom = jnp.sum(e, axis=-1, keepdims=True)
        # NOTE: a fully-masked query row softmaxes to ~uniform over -1e9 keys
        # (same as the reference implementation).
        if want_attn:
            p = e / denom                                  # exact probs (returned)
            out_refs[1][...] = p                           # lane-dense [64,64] store
        else:
            p = e * pl.reciprocal(denom, approx=True)      # EUP slot, hidden-only path

        ctx_f = jnp.dot(p, vf, preferred_element_type=jnp.float32)        # [64, 8]

        # ---- row -> head relayout + single Wo matmul (head-sum in the MXU) --
        ctx2d = _rows_to_heads(ctx_f)                      # [16, 32]
        x2 = x2d + jnp.dot(ctx2d, wo_ref[...],
                           preferred_element_type=jnp.float32)             # residual 1

        # ---- pre-LN feed-forward (ln2 gamma/beta folded into w1/b1) ---------
        n2 = _normalize(x2)
        ff = jnp.maximum(
            jnp.dot(n2, w1_ref[...], preferred_element_type=jnp.float32)
            + b1_ref[...], 0.0)
        ff = jnp.dot(ff, w2_ref[...], preferred_element_type=jnp.float32) \
            + b2_ref[...]
        out_ref[...] = x2 + ff                             # residual 2, [16, 32]

    return kernel


# --------------------------- static weight packing ---------------------------
def pack_static_params(params):
    """One-time weight repacking / LayerNorm folding (hoisted out of the
    per-call wrapper)."""
    wqkv_cat = jnp.concatenate([params["wq"], params["wk"], params["wv"]],
                               axis=1)                                  # [H, 3H]
    g1 = params["ln1_g"].reshape(H, 1)
    wqkv_f = g1 * wqkv_cat                                              # fold gamma1
    bqkv_f = params["ln1_b"] @ wqkv_cat                                 # [1, 3H]

    g2 = params["ln2_g"].reshape(H, 1)
    w1_f = g2 * params["w1"]                                            # fold gamma2
    b1_f = params["b1"] + params["ln2_b"] @ params["w1"]                # [1, F]

    return {
        "turn_pos_emb": params["turn_pos_emb"].astype(jnp.float32),
        "rpe_emb": params["rpe_emb"].astype(jnp.float32),
        "wqkv": wqkv_f.astype(jnp.float32),
        "bqkv": bqkv_f.astype(jnp.float32),
        "wo": params["wo"].astype(jnp.float32),
        "w1": w1_f.astype(jnp.float32),
        "b1": b1_f.astype(jnp.float32),
        "w2": params["w2"].astype(jnp.float32),
        "b2": params["b2"].astype(jnp.float32),
    }


# --------------------------- core module (wrapper) ---------------------------
def _full_spec(shape):
    zeros = (0,) * len(shape)
    return pl.BlockSpec(shape, lambda i: zeros)


@functools.partial(jax.jit, static_argnames=("remove_rpe_weight", "want_attn"))
def core_module_pallas(packed, input_embds, attention_mask, pairwise_dist,
                       turn_position_ids, remove_rpe_weight=False,
                       want_attn=False):
    # --- XLA glue: tiny embedding gathers + per-call bias assembly -----------
    tpe = packed["turn_pos_emb"][turn_position_ids]                     # [B,S,H]
    x2d = (input_embds.astype(jnp.float32) + tpe).reshape(B * S, H)     # [16,32]

    dist = jnp.clip(pairwise_dist, -MAX_DIST, MAX_DIST) + MAX_DIST
    rpe = packed["rpe_emb"][dist]                                       # [B,S,S,NH]
    rpe = jnp.transpose(rpe, (0, 3, 1, 2))                              # [B,NH,S,S]
    if remove_rpe_weight:
        rpe = jnp.zeros_like(rpe)
    mask_bias = (attention_mask.astype(jnp.float32) - 1.0) * 1e9        # [B,S]
    bias_blocks = (rpe + mask_bias[:, None, None, :]).reshape(Z, S, S)

    # Block-diagonal [64,64] bias: rpe+mask on the (b,h) diagonal blocks,
    # -1e9 everywhere else (kills cross-(batch,head) score entries).
    eye = jnp.eye(Z, dtype=bool)
    bias64 = jnp.where(eye[:, None, :, None],
                       bias_blocks[:, :, None, :],
                       jnp.float32(NEG)).reshape(ZS, ZS)

    in_arrays = (x2d, bias64,
                 packed["wqkv"], packed["bqkv"], packed["wo"],
                 packed["w1"], packed["b1"], packed["w2"], packed["b2"])
    in_specs = [_full_spec(a.shape) for a in in_arrays]

    out_shape = [jax.ShapeDtypeStruct((B * S, H), jnp.float32)]
    out_specs = [_full_spec((B * S, H))]
    if want_attn:
        out_shape.append(jax.ShapeDtypeStruct((ZS, ZS), jnp.float32))
        out_specs.append(_full_spec((ZS, ZS)))

    outs = pl.pallas_call(
        _make_encoder_kernel(want_attn),
        out_shape=tuple(out_shape),
        grid_spec=pltpu.PrefetchScalarGridSpec(
            num_scalar_prefetch=0,
            grid=(1,),                       # single step: whole batch at once
            in_specs=in_specs,
            out_specs=tuple(out_specs)),
        compiler_params=pltpu.CompilerParams(
            dimension_semantics=("arbitrary",),
            vmem_limit_bytes=16 * 1024 * 1024),   # resident data ~100 KB; VMEM not a constraint
    )(*in_arrays)

    hidden = outs[0].reshape(B, S, H)
    results = [hidden]
    if want_attn:
        # Extract the (b,h) diagonal blocks of the lane-dense [64,64] P tile.
        p4 = outs[1].reshape(Z, S, Z, S)
        attn = jnp.einsum('iajb,ij->iab', p4,
                          jnp.eye(Z, dtype=jnp.float32)).reshape(B, NH, S, S)
        results.append(attn)
    return tuple(results)


# ------------------------------ ContextEncoder -------------------------------
class Vocab:
    pad_id = 0


class ContextEncoder:
    """JAX/Pallas port of models/lgcm_model.py::ContextEncoder."""

    def __init__(self, params, vocab):
        self.params = params
        self.vocab = vocab
        self.pad_id = vocab.pad_id
        # One-time static weight repacking / LN folding (not per forward).
        self.packed = pack_static_params(params)

    def forward(self, input_embds, attention_mask, pairwise_dist,
                turn_position_ids, output_attentions=None, output_gates=False,
                remove_rpe_weight=False):
        want_attn = bool(output_attentions) or bool(output_gates)
        encoder_out = core_module_pallas(
            self.packed, input_embds, attention_mask, pairwise_dist,
            turn_position_ids, remove_rpe_weight=remove_rpe_weight,
            want_attn=want_attn)
        if output_attentions:
            return encoder_out[1]
        if output_gates:
            # TODO(synk): synthetic core has no gating module; attention probs
            # are returned as a stand-in for gates.
            return encoder_out[-1]
        return (encoder_out[0], attention_mask)

    __call__ = forward


# ------------------------------ param creation --------------------------------
def make_params(key):
    ks = jax.random.split(key, 8)
    sc = 0.02
    return {
        "turn_pos_emb": sc * jax.random.normal(ks[0], (MAX_TURNS, H), jnp.float32),
        "rpe_emb": sc * jax.random.normal(ks[1], (2 * MAX_DIST + 1, NH), jnp.float32),
        "wq": sc * jax.random.normal(ks[2], (H, H), jnp.float32),
        "wk": sc * jax.random.normal(ks[3], (H, H), jnp.float32),
        "wv": sc * jax.random.normal(ks[4], (H, H), jnp.float32),
        "wo": sc * jax.random.normal(ks[5], (H, H), jnp.float32),
        "w1": sc * jax.random.normal(ks[6], (H, F), jnp.float32),
        "b1": jnp.zeros((1, F), jnp.float32),
        "w2": sc * jax.random.normal(ks[7], (F, H), jnp.float32),
        "b2": jnp.zeros((1, H), jnp.float32),
        "ln1_g": jnp.ones((1, H), jnp.float32),
        "ln1_b": jnp.zeros((1, H), jnp.float32),
        "ln2_g": jnp.ones((1, H), jnp.float32),
        "ln2_b": jnp.zeros((1, H), jnp.float32),
    }


# ------------------------------ pure-JAX reference ----------------------------
def reference_forward(params, input_embds, attention_mask, pairwise_dist,
                      turn_position_ids):
    x = input_embds + params["turn_pos_emb"][turn_position_ids]
    dist = jnp.clip(pairwise_dist, -MAX_DIST, MAX_DIST) + MAX_DIST
    rpe = jnp.transpose(params["rpe_emb"][dist], (0, 3, 1, 2))       # [B,NH,S,S]
    mask_bias = (attention_mask.astype(jnp.float32) - 1.0)[:, None, None, :] * 1e9

    def ln(v, g, b):
        mu = v.mean(-1, keepdims=True)
        var = ((v - mu) ** 2).mean(-1, keepdims=True)
        return (v - mu) * jax.lax.rsqrt(var + 1e-5) * g + b

    h = ln(x, params["ln1_g"][0], params["ln1_b"][0])
    q = (h @ params["wq"]).reshape(B, S, NH, HD).transpose(0, 2, 1, 3)
    k = (h @ params["wk"]).reshape(B, S, NH, HD).transpose(0, 2, 1, 3)
    v = (h @ params["wv"]).reshape(B, S, NH, HD).transpose(0, 2, 1, 3)
    s = jnp.einsum("bhqd,bhkd->bhqk", q, k) / (HD ** 0.5) + rpe + mask_bias
    p = jax.nn.softmax(s, axis=-1)
    ctx = jnp.einsum("bhqk,bhkd->bhqd", p, v).transpose(0, 2, 1, 3).reshape(B, S, H)
    x2 = x + ctx @ params["wo"]
    h2 = ln(x2, params["ln2_g"][0], params["ln2_b"][0])
    ff = jnp.maximum(h2 @ params["w1"] + params["b1"][0], 0.0) @ params["w2"] \
        + params["b2"][0]
    return x2 + ff, p


# ------------------------------------ main ------------------------------------
if __name__ == "__main__":
    key = jax.random.PRNGKey(0)
    kp, ke, kt = jax.random.split(key, 3)

    params = make_params(kp)
    input_embds = jax.random.normal(ke, (B, S, H), jnp.float32)
    attention_mask = jnp.array(
        [[1, 1, 1, 1, 1, 1, 1, 1],
         [1, 1, 1, 1, 1, 1, 0, 0]], jnp.int32)           # last 2 of b=1 are pad
    idx = jnp.arange(S)
    pairwise_dist = jnp.broadcast_to(idx[None, :] - idx[:, None],
                                     (B, S, S)).astype(jnp.int32)
    turn_position_ids = jax.random.randint(kt, (B, S), 0, MAX_TURNS, jnp.int32)

    encoder = ContextEncoder(params, Vocab())

    # Default path: hidden states only (no attention-prob writeback).
    hidden, mask_out = encoder(input_embds, attention_mask, pairwise_dist,
                               turn_position_ids)
    hidden = jax.block_until_ready(hidden)

    # Attention-probability path (separate pallas_call variant, exact softmax).
    attn = jax.block_until_ready(
        encoder(input_embds, attention_mask, pairwise_dist, turn_position_ids,
                output_attentions=True))

    ref_hidden, ref_attn = reference_forward(params, input_embds, attention_mask,
                                             pairwise_dist, turn_position_ids)
    assert jnp.allclose(hidden, ref_hidden, atol=2e-3, rtol=2e-3), \
        "hidden mismatch vs reference"
    assert jnp.allclose(attn, ref_attn, atol=5e-3, rtol=5e-3), \
        "attention-prob mismatch vs reference"
    assert mask_out.shape == (B, S)

    print("KERNEL_OK")
</pallas_src>

<mosaic_0001>
module attributes {stable_mosaic.version = 11 : i64} {
  func.func @kernel(%arg0: i32, %arg1: memref<16x32xf32, #tpu.memory_space<vmem>>, %arg2: memref<64x64xf32, #tpu.memory_space<vmem>>, %arg3: memref<32x96xf32, #tpu.memory_space<vmem>>, %arg4: memref<1x96xf32, #tpu.memory_space<vmem>>, %arg5: memref<32x32xf32, #tpu.memory_space<vmem>>, %arg6: memref<32x64xf32, #tpu.memory_space<vmem>>, %arg7: memref<1x64xf32, #tpu.memory_space<vmem>>, %arg8: memref<64x32xf32, #tpu.memory_space<vmem>>, %arg9: memref<1x32xf32, #tpu.memory_space<vmem>>, %arg10: memref<16x32xf32, #tpu.memory_space<vmem>>) attributes {dimension_semantics = [#tpu.dimension_semantics<arbitrary>], iteration_bounds = array<i64: 1>, scalar_prefetch = 0 : i64, scratch_operands = 0 : i64, tpu.core_type = #tpu.core_type<tc>, window_params = [{pipeline_mode = #tpu.pipeline_mode<synchronous>, transform_indices = @transform_0, window_bounds = array<i64: 16, 32>}, {pipeline_mode = #tpu.pipeline_mode<synchronous>, transform_indices = @transform_1, window_bounds = array<i64: 64, 64>}, {pipeline_mode = #tpu.pipeline_mode<synchronous>, transform_indices = @transform_2, window_bounds = array<i64: 32, 96>}, {pipeline_mode = #tpu.pipeline_mode<synchronous>, transform_indices = @transform_3, window_bounds = array<i64: 1, 96>}, {pipeline_mode = #tpu.pipeline_mode<synchronous>, transform_indices = @transform_4, window_bounds = array<i64: 32, 32>}, {pipeline_mode = #tpu.pipeline_mode<synchronous>, transform_indices = @transform_5, window_bounds = array<i64: 32, 64>}, {pipeline_mode = #tpu.pipeline_mode<synchronous>, transform_indices = @transform_6, window_bounds = array<i64: 1, 64>}, {pipeline_mode = #tpu.pipeline_mode<synchronous>, transform_indices = @transform_7, window_bounds = array<i64: 64, 32>}, {pipeline_mode = #tpu.pipeline_mode<synchronous>, transform_indices = @transform_8, window_bounds = array<i64: 1, 32>}, {pipeline_mode = #tpu.pipeline_mode<synchronous>, transform_indices = @transform_9, window_bounds = array<i64: 16, 32>}]} {
    %c0 = arith.constant 0 : index
    %c0_0 = arith.constant 0 : index
    %0 = vector.load %arg1[%c0, %c0_0] : memref<16x32xf32, #tpu.memory_space<vmem>>, vector<16x32xf32>
    %cst = arith.constant dense<0.000000e+00> : vector<16xf32>
    %1 = vector.multi_reduction <add>, %0, %cst [1] : vector<16x32xf32> to vector<16xf32>
    %2 = vector.shape_cast %1 : vector<16xf32> to vector<16x1xf32>
    %cst_1 = arith.constant 3.200000e+01 : f32
    %3 = vector.broadcast %cst_1 : f32 to vector<16x1xf32>
    %4 = arith.divf %2, %3 : vector<16x1xf32>
    %5 = vector.broadcast %4 : vector<16x1xf32> to vector<16x32xf32>
    %6 = arith.subf %0, %5 : vector<16x32xf32>
    %7 = arith.mulf %6, %6 : vector<16x32xf32>
    %cst_2 = arith.constant dense<0.000000e+00> : vector<16xf32>
    %8 = vector.multi_reduction <add>, %7, %cst_2 [1] : vector<16x32xf32> to vector<16xf32>
    %9 = vector.shape_cast %8 : vector<16xf32> to vector<16x1xf32>
    %cst_3 = arith.constant 3.200000e+01 : f32
    %10 = vector.broadcast %cst_3 : f32 to vector<16x1xf32>
    %11 = arith.divf %9, %10 : vector<16x1xf32>
    %12 = vector.broadcast %4 : vector<16x1xf32> to vector<16x32xf32>
    %13 = arith.subf %0, %12 : vector<16x32xf32>
    %cst_4 = arith.constant 9.99999974E-6 : f32
    %14 = vector.broadcast %cst_4 : f32 to vector<16x1xf32>
    %15 = arith.addf %11, %14 : vector<16x1xf32>
    %16 = math.rsqrt %15 : vector<16x1xf32>
    %17 = vector.broadcast %16 : vector<16x1xf32> to vector<16x32xf32>
    %18 = arith.mulf %13, %17 : vector<16x32xf32>
    %c0_5 = arith.constant 0 : index
    %c0_6 = arith.constant 0 : index
    %19 = vector.load %arg3[%c0_5, %c0_6] : memref<32x96xf32, #tpu.memory_space<vmem>>, vector<32x96xf32>
    %cst_7 = arith.constant dense<0.000000e+00> : vector<16x96xf32>
    %20 = tpu.matmul %18, %19, %cst_7 {dimension_numbers = #tpu.dot_dimension_numbers<[1], [0], [0], [1], [0, 0, 1, 1], [], []>} : vector<16x32xf32>, vector<32x96xf32>, vector<16x96xf32> -> vector<16x96xf32>
    %c0_8 = arith.constant 0 : index
    %c0_9 = arith.constant 0 : index
    %21 = vector.load %arg4[%c0_8, %c0_9] : memref<1x96xf32, #tpu.memory_space<vmem>>, vector<1x96xf32>
    %22 = vector.broadcast %21 : vector<1x96xf32> to vector<16x96xf32>
    %23 = arith.addf %20, %22 : vector<16x96xf32>
    %24 = vector.extract_strided_slice %23 {offsets = [0, 0], sizes = [8, 8], strides = [1, 1]} : vector<16x96xf32> to vector<8x8xf32>
    %25 = vector.extract_strided_slice %23 {offsets = [0, 8], sizes = [8, 8], strides = [1, 1]} : vector<16x96xf32> to vector<8x8xf32>
    %26 = vector.extract_strided_slice %23 {offsets = [0, 16], sizes = [8, 8], strides = [1, 1]} : vector<16x96xf32> to vector<8x8xf32>
    %27 = vector.extract_strided_slice %23 {offsets = [0, 24], sizes = [8, 8], strides = [1, 1]} : vector<16x96xf32> to vector<8x8xf32>
    %28 = vector.extract_strided_slice %23 {offsets = [8, 0], sizes = [8, 8], strides = [1, 1]} : vector<16x96xf32> to vector<8x8xf32>
    %29 = vector.extract_strided_slice %23 {offsets = [8, 8], sizes = [8, 8], strides = [1, 1]} : vector<16x96xf32> to vector<8x8xf32>
    %30 = vector.extract_strided_slice %23 {offsets = [8, 16], sizes = [8, 8], strides = [1, 1]} : vector<16x96xf32> to vector<8x8xf32>
    %31 = vector.extract_strided_slice %23 {offsets = [8, 24], sizes = [8, 8], strides = [1, 1]} : vector<16x96xf32> to vector<8x8xf32>
    %32 = tpu.concatenate %24, %25, %26, %27, %28, %29, %30, %31 in 0 : vector<8x8xf32>, vector<8x8xf32>, vector<8x8xf32>, vector<8x8xf32>, vector<8x8xf32>, vector<8x8xf32>, vector<8x8xf32>, vector<8x8xf32> -> vector<64x8xf32>
    %33 = vector.extract_strided_slice %23 {offsets = [0, 32], sizes = [8, 8], strides = [1, 1]} : vector<16x96xf32> to vector<8x8xf32>
    %34 = vector.extract_strided_slice %23 {offsets = [0, 40], sizes = [8, 8], strides = [1, 1]} : vector<16x96xf32> to vector<8x8xf32>
    %35 = vector.extract_strided_slice %23 {offsets = [0, 48], sizes = [8, 8], strides = [1, 1]} : vector<16x96xf32> to vector<8x8xf32>
    %36 = vector.extract_strided_slice %23 {offsets = [0, 56], sizes = [8, 8], strides = [1, 1]} : vector<16x96xf32> to vector<8x8xf32>
    %37 = vector.extract_strided_slice %23 {offsets = [8, 32], sizes = [8, 8], strides = [1, 1]} : vector<16x96xf32> to vector<8x8xf32>
    %38 = vector.extract_strided_slice %23 {offsets = [8, 40], sizes = [8, 8], strides = [1, 1]} : vector<16x96xf32> to vector<8x8xf32>
    %39 = vector.extract_strided_slice %23 {offsets = [8, 48], sizes = [8, 8], strides = [1, 1]} : vector<16x96xf32> to vector<8x8xf32>
    %40 = vector.extract_strided_slice %23 {offsets = [8, 56], sizes = [8, 8], strides = [1, 1]} : vector<16x96xf32> to vector<8x8xf32>
    %41 = tpu.concatenate %33, %34, %35, %36, %37, %38, %39, %40 in 0 : vector<8x8xf32>, vector<8x8xf32>, vector<8x8xf32>, vector<8x8xf32>, vector<8x8xf32>, vector<8x8xf32>, vector<8x8xf32>, vector<8x8xf32> -> vector<64x8xf32>
    %42 = vector.extract_strided_slice %23 {offsets = [0, 64], sizes = [8, 8], strides = [1, 1]} : vector<16x96xf32> to vector<8x8xf32>
    %43 = vector.extract_strided_slice %23 {offsets = [0, 72], sizes = [8, 8], strides = [1, 1]} : vector<16x96xf32> to vector<8x8xf32>
    %44 = vector.extract_strided_slice %23 {offsets = [0, 80], sizes = [8, 8], strides = [1, 1]} : vector<16x96xf32> to vector<8x8xf32>
    %45 = vector.extract_strided_slice %23 {offsets = [0, 88], sizes = [8, 8], strides = [1, 1]} : vector<16x96xf32> to vector<8x8xf32>
    %46 = vector.extract_strided_slice %23 {offsets = [8, 64], sizes = [8, 8], strides = [1, 1]} : vector<16x96xf32> to vector<8x8xf32>
    %47 = vector.extract_strided_slice %23 {offsets = [8, 72], sizes = [8, 8], strides = [1, 1]} : vector<16x96xf32> to vector<8x8xf32>
    %48 = vector.extract_strided_slice %23 {offsets = [8, 80], sizes = [8, 8], strides = [1, 1]} : vector<16x96xf32> to vector<8x8xf32>
    %49 = vector.extract_strided_slice %23 {offsets = [8, 88], sizes = [8, 8], strides = [1, 1]} : vector<16x96xf32> to vector<8x8xf32>
    %50 = tpu.concatenate %42, %43, %44, %45, %46, %47, %48, %49 in 0 : vector<8x8xf32>, vector<8x8xf32>, vector<8x8xf32>, vector<8x8xf32>, vector<8x8xf32>, vector<8x8xf32>, vector<8x8xf32>, vector<8x8xf32> -> vector<64x8xf32>
    "tpu.trace_start"() <{level = 10 : i32, message = "qd,kd->qk"}> : () -> ()
    %cst_10 = arith.constant dense<0.000000e+00> : vector<64x64xf32>
    %51 = tpu.matmul %32, %41, %cst_10 {dimension_numbers = #tpu.dot_dimension_numbers<[1], [1], [0], [0], [0, 0, 1, 0], [], []>} : vector<64x8xf32>, vector<64x8xf32>, vector<64x64xf32> -> vector<64x64xf32>
    "tpu.trace_stop"() : () -> ()
    %cst_11 = arith.constant 0.353553385 : f32
    %52 = vector.broadcast %cst_11 : f32 to vector<64x64xf32>
    %53 = arith.mulf %51, %52 : vector<64x64xf32>
    %c0_12 = arith.constant 0 : index
    %c0_13 = arith.constant 0 : index
    %54 = vector.load %arg2[%c0_12, %c0_13] : memref<64x64xf32, #tpu.memory_space<vmem>>, vector<64x64xf32>
    %55 = arith.addf %53, %54 : vector<64x64xf32>
    %cst_14 = arith.constant dense<0xFF800000> : vector<64xf32>
    %56 = vector.multi_reduction <maximumf>, %55, %cst_14 [1] : vector<64x64xf32> to vector<64xf32>
    %57 = vector.shape_cast %56 : vector<64xf32> to vector<64x1xf32>
    %58 = vector.broadcast %57 : vector<64x1xf32> to vector<64x64xf32>
    %59 = arith.subf %55, %58 : vector<64x64xf32>
    %60 = math.exp %59 : vector<64x64xf32>
    %cst_15 = arith.constant dense<0.000000e+00> : vector<64xf32>
    %61 = vector.multi_reduction <add>, %60, %cst_15 [1] : vector<64x64xf32> to vector<64xf32>
    %62 = vector.shape_cast %61 : vector<64xf32> to vector<64x1xf32>
    %63 = tpu.reciprocal %62 {approx = true} : vector<64x1xf32> -> vector<64x1xf32>
    %64 = vector.broadcast %63 : vector<64x1xf32> to vector<64x64xf32>
    %65 = arith.mulf %60, %64 : vector<64x64xf32>
    %cst_16 = arith.constant dense<0.000000e+00> : vector<64x8xf32>
    %66 = tpu.matmul %65, %50, %cst_16 {dimension_numbers = #tpu.dot_dimension_numbers<[1], [0], [0], [1], [0, 0, 1, 1], [], []>} : vector<64x64xf32>, vector<64x8xf32>, vector<64x8xf32> -> vector<64x8xf32>
    %67 = vector.extract_strided_slice %66 {offsets = [0, 0], sizes = [8, 8], strides = [1, 1]} : vector<64x8xf32> to vector<8x8xf32>
    %68 = vector.extract_strided_slice %66 {offsets = [8, 0], sizes = [8, 8], strides = [1, 1]} : vector<64x8xf32> to vector<8x8xf32>
    %69 = vector.extract_strided_slice %66 {offsets = [16, 0], sizes = [8, 8], strides = [1, 1]} : vector<64x8xf32> to vector<8x8xf32>
    %70 = vector.extract_strided_slice %66 {offsets = [24, 0], sizes = [8, 8], strides = [1, 1]} : vector<64x8xf32> to vector<8x8xf32>
    %71 = tpu.concatenate %67, %68, %69, %70 in 1 : vector<8x8xf32>, vector<8x8xf32>, vector<8x8xf32>, vector<8x8xf32> -> vector<8x32xf32>
    %72 = vector.extract_strided_slice %66 {offsets = [32, 0], sizes = [8, 8], strides = [1, 1]} : vector<64x8xf32> to vector<8x8xf32>
    %73 = vector.extract_strided_slice %66 {offsets = [40, 0], sizes = [8, 8], strides = [1, 1]} : vector<64x8xf32> to vector<8x8xf32>
    %74 = vector.extract_strided_slice %66 {offsets = [48, 0], sizes = [8, 8], strides = [1, 1]} : vector<64x8xf32> to vector<8x8xf32>
    %75 = vector.extract_strided_slice %66 {offsets = [56, 0], sizes = [8, 8], strides = [1, 1]} : vector<64x8xf32> to vector<8x8xf32>
    %76 = tpu.concatenate %72, %73, %74, %75 in 1 : vector<8x8xf32>, vector<8x8xf32>, vector<8x8xf32>, vector<8x8xf32> -> vector<8x32xf32>
    %77 = tpu.concatenate %71, %76 in 0 : vector<8x32xf32>, vector<8x32xf32> -> vector<16x32xf32>
    %c0_17 = arith.constant 0 : index
    %c0_18 = arith.constant 0 : index
    %78 = vector.load %arg5[%c0_17, %c0_18] : memref<32x32xf32, #tpu.memory_space<vmem>>, vector<32x32xf32>
    %cst_19 = arith.constant dense<0.000000e+00> : vector<16x32xf32>
    %79 = tpu.matmul %77, %78, %cst_19 {dimension_numbers = #tpu.dot_dimension_numbers<[1], [0], [0], [1], [0, 0, 1, 1], [], []>} : vector<16x32xf32>, vector<32x32xf32>, vector<16x32xf32> -> vector<16x32xf32>
    %80 = arith.addf %0, %79 : vector<16x32xf32>
    %cst_20 = arith.constant dense<0.000000e+00> : vector<16xf32>
    %81 = vector.multi_reduction <add>, %80, %cst_20 [1] : vector<16x32xf32> to vector<16xf32>
    %82 = vector.shape_cast %81 : vector<16xf32> to vector<16x1xf32>
    %cst_21 = arith.constant 3.200000e+01 : f32
    %83 = vector.broadcast %cst_21 : f32 to vector<16x1xf32>
    %84 = arith.divf %82, %83 : vector<16x1xf32>
    %85 = vector.broadcast %84 : vector<16x1xf32> to vector<16x32xf32>
    %86 = arith.subf %80, %85 : vector<16x32xf32>
    %87 = arith.mulf %86, %86 : vector<16x32xf32>
    %cst_22 = arith.constant dense<0.000000e+00> : vector<16xf32>
    %88 = vector.multi_reduction <add>, %87, %cst_22 [1] : vector<16x32xf32> to vector<16xf32>
    %89 = vector.shape_cast %88 : vector<16xf32> to vector<16x1xf32>
    %cst_23 = arith.constant 3.200000e+01 : f32
    %90 = vector.broadcast %cst_23 : f32 to vector<16x1xf32>
    %91 = arith.divf %89, %90 : vector<16x1xf32>
    %92 = vector.broadcast %84 : vector<16x1xf32> to vector<16x32xf32>
    %93 = arith.subf %80, %92 : vector<16x32xf32>
    %cst_24 = arith.constant 9.99999974E-6 : f32
    %94 = vector.broadcast %cst_24 : f32 to vector<16x1xf32>
    %95 = arith.addf %91, %94 : vector<16x1xf32>
    %96 = math.rsqrt %95 : vector<16x1xf32>
    %97 = vector.broadcast %96 : vector<16x1xf32> to vector<16x32xf32>
    %98 = arith.mulf %93, %97 : vector<16x32xf32>
    %c0_25 = arith.constant 0 : index
    %c0_26 = arith.constant 0 : index
    %99 = vector.load %arg6[%c0_25, %c0_26] : memref<32x64xf32, #tpu.memory_space<vmem>>, vector<32x64xf32>
    %cst_27 = arith.constant dense<0.000000e+00> : vector<16x64xf32>
    %100 = tpu.matmul %98, %99, %cst_27 {dimension_numbers = #tpu.dot_dimension_numbers<[1], [0], [0], [1], [0, 0, 1, 1], [], []>} : vector<16x32xf32>, vector<32x64xf32>, vector<16x64xf32> -> vector<16x64xf32>
    %c0_28 = arith.constant 0 : index
    %c0_29 = arith.constant 0 : index
    %101 = vector.load %arg7[%c0_28, %c0_29] : memref<1x64xf32, #tpu.memory_space<vmem>>, vector<1x64xf32>
    %102 = vector.broadcast %101 : vector<1x64xf32> to vector<16x64xf32>
    %103 = arith.addf %100, %102 : vector<16x64xf32>
    %cst_30 = arith.constant 0.000000e+00 : f32
    %104 = vector.broadcast %cst_30 : f32 to vector<16x64xf32>
    %105 = arith.maximumf %103, %104 : vector<16x64xf32>
    %c0_31 = arith.constant 0 : index
    %c0_32 = arith.constant 0 : index
    %106 = vector.load %arg8[%c0_31, %c0_32] : memref<64x32xf32, #tpu.memory_space<vmem>>, vector<64x32xf32>
    %cst_33 = arith.constant dense<0.000000e+00> : vector<16x32xf32>
    %107 = tpu.matmul %105, %106, %cst_33 {dimension_numbers = #tpu.dot_dimension_numbers<[1], [0], [0], [1], [0, 0, 1, 1], [], []>} : vector<16x64xf32>, vector<64x32xf32>, vector<16x32xf32> -> vector<16x32xf32>
    %c0_34 = arith.constant 0 : index
    %c0_35 = arith.constant 0 : index
    %108 = vector.load %arg9[%c0_34, %c0_35] : memref<1x32xf32, #tpu.memory_space<vmem>>, vector<1x32xf32>
    %109 = vector.broadcast %108 : vector<1x32xf32> to vector<16x32xf32>
    %110 = arith.addf %107, %109 : vector<16x32xf32>
    %111 = arith.addf %80, %110 : vector<16x32xf32>
    %c0_36 = arith.constant 0 : index
    %c0_37 = arith.constant 0 : index
    %112 = vector.load %arg10[%c0_36, %c0_37] : memref<16x32xf32, #tpu.memory_space<vmem>>, vector<16x32xf32>
    tpu.vector_store %arg10[%c0_36, %c0_37], %111 {strides = array<i32>} : memref<16x32xf32, #tpu.memory_space<vmem>>, vector<16x32xf32>,
    return
  }
  func.func @transform_0(%arg0: i32) -> (i32, i32) {
    %c0_i32 = arith.constant 0 : i32
    %c0_i32_0 = arith.constant 0 : i32
    %c0_i32_1 = arith.constant 0 : i32
    return %c0_i32, %c0_i32_0 : i32, i32
  }
  func.func @transform_1(%arg0: i32) -> (i32, i32) {
    %c0_i32 = arith.constant 0 : i32
    %c0_i32_0 = arith.constant 0 : i32
    %c0_i32_1 = arith.constant 0 : i32
    return %c0_i32, %c0_i32_0 : i32, i32
  }
  func.func @transform_2(%arg0: i32) -> (i32, i32) {
    %c0_i32 = arith.constant 0 : i32
    %c0_i32_0 = arith.constant 0 : i32
    %c0_i32_1 = arith.constant 0 : i32
    return %c0_i32, %c0_i32_0 : i32, i32
  }
  func.func @transform_3(%arg0: i32) -> (i32, i32) {
    %c0_i32 = arith.constant 0 : i32
    %c0_i32_0 = arith.constant 0 : i32
    %c0_i32_1 = arith.constant 0 : i32
    return %c0_i32, %c0_i32_0 : i32, i32
  }
  func.func @transform_4(%arg0: i32) -> (i32, i32) {
    %c0_i32 = arith.constant 0 : i32
    %c0_i32_0 = arith.constant 0 : i32
    %c0_i32_1 = arith.constant 0 : i32
    return %c0_i32, %c0_i32_0 : i32, i32
  }
  func.func @transform_5(%arg0: i32) -> (i32, i32) {
    %c0_i32 = arith.constant 0 : i32
    %c0_i32_0 = arith.constant 0 : i32
    %c0_i32_1 = arith.constant 0 : i32
    return %c0_i32, %c0_i32_0 : i32, i32
  }
  func.func @transform_6(%arg0: i32) -> (i32, i32) {
    %c0_i32 = arith.constant 0 : i32
    %c0_i32_0 = arith.constant 0 : i32
    %c0_i32_1 = arith.constant 0 : i32
    return %c0_i32, %c0_i32_0 : i32, i32
  }
  func.func @transform_7(%arg0: i32) -> (i32, i32) {
    %c0_i32 = arith.constant 0 : i32
    %c0_i32_0 = arith.constant 0 : i32
    %c0_i32_1 = arith.constant 0 : i32
    return %c0_i32, %c0_i32_0 : i32, i32
  }
  func.func @transform_8(%arg0: i32) -> (i32, i32) {
    %c0_i32 = arith.constant 0 : i32
    %c0_i32_0 = arith.constant 0 : i32
    %c0_i32_1 = arith.constant 0 : i32
    return %c0_i32, %c0_i32_0 : i32, i32
  }
  func.func @transform_9(%arg0: i32) -> (i32, i32) {
    %c0_i32 = arith.constant 0 : i32
    %c0_i32_0 = arith.constant 0 : i32
    %c0_i32_1 = arith.constant 0 : i32
    return %c0_i32, %c0_i32_0 : i32, i32
  }
}

</mosaic_0001>

<bundles_post_ra>
// kernel: core_module_pallas.1
= control target key start
LH: loop header
LB: loop body
LE: loop exit
PB: predicated region body
PF: predicated region fallthrough
CT: control target
= control target key end

     0   :  { %vm35_vm0 = vcmask 261120   ;;  %s1542_s0 = inlined_call_operand.vmem [shape: f32[16,32], index: 0, kind: input, shape index: {}]   ;;  %s1543_s1 = inlined_call_operand.vmem [shape: f32[64,64], index: 1, kind: input, shape index: {}]   ;;  %s1544_s2 = inlined_call_operand.vmem [shape: f32[32,96], index: 2, kind: input, shape index: {}]   ;;  %s1545_s3 = inlined_call_operand.vmem [shape: f32[1,96], index: 3, kind: input, shape index: {}]   ;;  %s1546_s4 = inlined_call_operand.vmem [shape: f32[32,32], index: 4, kind: input, shape index: {}]   ;;  %s1547_s5 = inlined_call_operand.vmem [shape: f32[32,64], index: 5, kind: input, shape index: {}]   ;;  %s1548_s6 = inlined_call_operand.vmem [shape: f32[1,64], index: 6, kind: input, shape index: {}]   ;;  %s1549_s7 = inlined_call_operand.vmem [shape: f32[64,32], index: 7, kind: input, shape index: {}]   ;;  %s1550_s8 = inlined_call_operand.vmem [shape: f32[1,32], index: 8, kind: input, shape index: {}]   ;;  %s1551_s9 = inlined_call_operand.hbm [shape: f32[16,32], index: 9, kind: output, shape index: {}]  }
   0x1   :  { %v1282_v0 = vld [vmem:[%s1542_s0] sm:$0xff]  ;;  %v1287_v1 = vld [vmem:[%s1542_s0 + $0x8] sm:$0xff] }
   0x2   :  { %14 = vsyncpa [#allocation3], 0  ;;  %v36_v2 = vsel %vm35_vm0, %v1282_v0, 0.0  ;;  %v39_v3 = vsel %vm35_vm0, %v1287_v1, 0.0  ;;  %v66_v14 = vld [vmem:[%s1544_s2 + $0x18] sm:$0xff]  ;;  %v65_v15 = vld [vmem:[%s1544_s2 + $0x10] sm:$0xff] }
   0x3   :  { %37 = vadd.xlane.f32.xlu0 %v36_v2  ;;  %1039 = vmatprep.subr.mxu0 %v66_v14  ;;  %v64_v16 = vld [vmem:[%s1544_s2 + $0x8] sm:$0xff]  ;;  %v63_v17 = vld [vmem:[%s1544_s2] sm:$0xff]  ;;  %vm185_vm1 = vcmask 64512   ;;  %s1219_s21 = smov 112   ;;  %s1220_s22 = smov 104   ;;  %vm347_vm2 = vcmask 523264  }
   0x4   :  { %1040 = vmatpush3.msra.mxu0 %v66_v14  ;;  %v944_v28 = vld [vmem:[%s1545_s3] ss:$0 sm:$0xff]  ;;  %s1221_s23 = smov 120   ;;  %s1222_s3 = smov 96   ;;  %v332_v48 = vld [vmem:[%s1543_s1 + $0x8] sm:$0xff]  ;;  %v334_v55 = vld [vmem:[%s1543_s1 + $0x18] sm:$0xff] }
   0x5   :  { %1041 = vmatprep.subr.mxu0 %v65_v15  ;;  %v331_v51 = vld [vmem:[%s1543_s1] sm:$0xff]  ;;  %v336_v2 = vld [vmem:[%s1543_s1 + $0x28] sm:$0xff]  ;;  %s1223_s18 = smov 64   ;;  %s1224_s24 = smov 8   ;;  %vm602_vm3 = vcmask 130048   ;;  %vm604_vm4 = vcmask 195584  }
   0x6   :  { %1042 = vmatpush3.msra.mxu0 %v65_v15  ;;  %s1225_s25 = smov 24   ;;  %s1226_s26 = smov 16  }
   0x7   :  { %40 = vadd.xlane.f32.xlu0 %v39_v3  ;;  %1043 = vmatprep.subr.mxu0 %v64_v16  ;;  %v333_v3 = vld [vmem:[%s1543_s1 + $0x10] sm:$0xff] }
   0x8   :  { %1044 = vmatpush3.msra.mxu0 %v64_v16 }
   0x9   :  { %1045 = vmatprep.subr.mxu0 %v63_v17 }
   0xa   :  { %1046 = vmatpush3.msra.mxu0 %v63_v17 }
  0x8c   :  { %v38_v4 = vpop.xlane.xlu0 %37 }
  0x8d   :  { %v43_v5 = vmul.f32 0.03125, %v38_v4 }
  0x8f   :  { %v45_v6 = vsub.f32 %v1282_v0, %v43_v5 }
  0x90   :  { %v41_v7 = vpop.xlane.xlu0 %40 }
  0x91   :  { %v44_v8 = vmul.f32 0.03125, %v41_v7  ;;  %v47_v9 = vmul.f32 %v45_v6, %v45_v6 }
  0x93   :  { %v46_v10 = vsub.f32 %v1287_v1, %v44_v8  ;;  %v49_v11 = vsel %vm35_vm0, %v47_v9, 0.0 }
  0x94   :  { %50 = vadd.xlane.f32.xlu1 %v49_v11  ;;  %v338_v11 = vld [vmem:[%s1543_s1 + $0x38] sm:$0xff] }
  0x95   :  { %v48_v12 = vmul.f32 %v46_v10, %v46_v10 }
  0x97   :  { %v52_v13 = vsel %vm35_vm0, %v48_v12, 0.0  ;;  %v335_v12 = vld [vmem:[%s1543_s1 + $0x20] sm:$0xff] }
  0x98   :  { %53 = vadd.xlane.f32.xlu1 %v52_v13 }
 0x11d   :  { %v51_v18 = vpop.xlane.xlu1 %50 }
 0x11e   :  { %v55_v19 = vmul.f32 0.03125, %v51_v18 }
 0x120   :  { %v57_v20 = vadd.f32 1e-05, %v55_v19 }
 0x121   :  { %v54_v21 = vpop.xlane.xlu1 %53 }
 0x122   :  { %1157 = vrsqrt.f32 %v57_v20  ;;  %v56_v22 = vmul.f32 0.03125, %v54_v21  ;;  %v337_v20 = vld [vmem:[%s1543_s1 + $0x30] sm:$0xff] }
 0x124   :  { %v58_v23 = vadd.f32 1e-05, %v56_v22 }
 0x126   :  { %1159 = vrsqrt.f32 %v58_v23 }
 0x12f   :  { %v1158_v24 = vpop.eup %1157 }
 0x130   :  { %v61_v25 = vmul.f32 %v1158_v24, %v45_v6 }
 0x132   :  { %1047 = vmatprep.mubr.msk.f32.mxu0 %vm35_vm0, %v61_v25 }
 0x133   :  { %v1160_v26 = vpop.eup %1159 }
 0x134   :  { %v62_v27 = vmul.f32 %v1160_v26, %v46_v10 }
 0x136   :  { %1048 = vmatmul.mubr.msk.f32.vlgmr.msra.gmra.mxu0 %vm35_vm0, %v62_v27 }
 0x1f6   :  { %v1049_v29 = vpop.f32.mrf.mxu0 }
 0x1f7   :  { %v1314_v30 = vadd.f32 %v1049_v29, %v944_v28 }
 0x1f8   :  { %v146_v31 = vpop.f32.mrf.mxu0 }
 0x1f9   :  { %v1316_v32 = vadd.f32 %v944_v28, %v146_v31  ;;  %165 = vrot.lane.b32.xlu1 %v1314_v30, %s1219_s21  ;;  %167 = vrot.lane.b32.xlu0 %v1314_v30, %s1220_s22 }
 0x1fb   :  { %1066 = vmatprep.mubr.msk.f32.mxu1 %vm185_vm1, %v1316_v32 }
 0x1fd   :  { %163 = vrot.lane.b32.xlu1 %v1314_v30, %s1221_s23  ;;  %158 = vrot.lane.b32.xlu0 %v1316_v32, %s1219_s21 }
 0x201   :  { %160 = vrot.lane.b32.xlu1 %v1316_v32, %s1220_s22 }
 0x205   :  { %156 = vrot.lane.b32.xlu1 %v1316_v32, %s1221_s23 }
 0x26b   :  { %v1326_v33 = vpop.permute.xlu1 %165  ;;  %v1328_v34 = vpop.permute.xlu0 %167 }
 0x26c   :  { %183 = vrot.lane.b32.xlu0 %v1328_v34, %s1222_s3  ;;  %181 = vrot.lane.b32.xlu1 %v1326_v33, %s1222_s3 }
 0x26f   :  { %v1332_v35 = vpop.permute.xlu1 %163  ;;  %v1336_v36 = vpop.permute.xlu0 %158 }
 0x270   :  { %179 = vrot.lane.b32.xlu0 %v1332_v35, %s1222_s3  ;;  %177 = vrot.lane.b32.xlu1 %v1314_v30, %s1222_s3 }
 0x273   :  { %v1338_v37 = vpop.permute.xlu1 %160 }
 0x274   :  { %173 = vrot.lane.b32.xlu1 %v1336_v36, %s1222_s3  ;;  %175 = vrot.lane.b32.xlu0 %v1338_v37, %s1222_s3 }
 0x277   :  { %v1342_v38 = vpop.permute.xlu1 %156 }
 0x278   :  { %169 = vrot.lane.b32.xlu1 %v1316_v32, %s1222_s3  ;;  %171 = vrot.lane.b32.xlu0 %v1342_v38, %s1222_s3 }
 0x2de   :  { %v184_v39 = vpop.permute.xlu0 %183  ;;  %v182_v40 = vpop.permute.xlu1 %181 }
 0x2df   :  { %1050 = vmatprep.subr.msk.mxu1 %vm185_vm1, %v184_v39 }
 0x2e0   :  { %1051 = vmatpush3.xpose.msk.msra.mxu1 %vm185_vm1, %v184_v39 }
 0x2e1   :  { %1052 = vmatprep.subr.msk.mxu1 %vm185_vm1, %v182_v40 }
 0x2e2   :  { %v180_v41 = vpop.permute.xlu0 %179  ;;  %v178_v42 = vpop.permute.xlu1 %177 }
 0x2e4   :  { %1053 = vmatpush3.xpose.msk.msra.mxu1 %vm185_vm1, %v182_v40 }
 0x2e5   :  { %1054 = vmatprep.subr.msk.mxu1 %vm185_vm1, %v180_v41 }
 0x2e6   :  { %v176_v43 = vpop.permute.xlu0 %175  ;;  %v174_v44 = vpop.permute.xlu1 %173 }
 0x2e8   :  { %1055 = vmatpush3.xpose.msk.msra.mxu1 %vm185_vm1, %v180_v41 }
 0x2e9   :  { %1056 = vmatprep.subr.msk.mxu1 %vm185_vm1, %v178_v42 }
 0x2ea   :  { %v172_v45 = vpop.permute.xlu0 %171  ;;  %v170_v46 = vpop.permute.xlu1 %169 }
 0x2ec   :  { %1057 = vmatpush3.xpose.msk.msra.mxu1 %vm185_vm1, %v178_v42 }
 0x2ed   :  { %1058 = vmatprep.subr.msk.mxu1 %vm185_vm1, %v176_v43 }
 0x2f0   :  { %1059 = vmatpush3.xpose.msk.msra.mxu1 %vm185_vm1, %v176_v43 }
 0x2f1   :  { %1060 = vmatprep.subr.msk.mxu1 %vm185_vm1, %v174_v44 }
 0x2f4   :  { %1061 = vmatpush3.xpose.msk.msra.mxu1 %vm185_vm1, %v174_v44 }
 0x2f5   :  { %1062 = vmatprep.subr.msk.mxu1 %vm185_vm1, %v172_v45 }
 0x2f8   :  { %1063 = vmatpush3.xpose.msk.msra.mxu1 %vm185_vm1, %v172_v45 }
 0x2f9   :  { %1064 = vmatprep.subr.msk.mxu1 %vm185_vm1, %v170_v46 }
 0x2fc   :  { %1065 = vmatpush3.xpose.msk.msra.mxu1 %vm185_vm1, %v170_v46 }
 0x2ff   :  { %1067 = vmatmul.mubr.msk.f32.vlgmr.msra.gmra.mxu1 %vm185_vm1, %v1342_v38 }
 0x300   :  { %1069 = vmatprep.mubr.msk.f32.mxu1 %vm185_vm1, %v1336_v36 }
 0x303   :  { %1070 = vmatmul.mubr.msk.f32.gmra.mxu1 %vm185_vm1, %v1338_v37 }
 0x304   :  { %1072 = vmatprep.mubr.msk.f32.mxu1 %vm185_vm1, %v1314_v30 }
 0x307   :  { %1073 = vmatmul.mubr.msk.f32.gmra.mxu1 %vm185_vm1, %v1332_v35 }
 0x308   :  { %1075 = vmatprep.mubr.msk.f32.mxu1 %vm185_vm1, %v1326_v33 }
 0x30b   :  { %1076 = vmatmul.mubr.msk.f32.gmra.mxu1 %vm185_vm1, %v1328_v34 }
 0x3bf   :  { %v1068_v47 = vpop.f32.mrf.mxu1 }
 0x3c0   :  { %v324_v49 = vmul.f32 0.35355338, %v1068_v47 }
 0x3c1   :  { %v284_v50 = vpop.f32.mrf.mxu1 }
 0x3c2   :  { %v323_v52 = vmul.f32 0.35355338, %v284_v50  ;;  %v340_v53 = vadd.f32 %v332_v48, %v324_v49 }
 0x3c3   :  { %v1071_v54 = vpop.f32.mrf.mxu1 }
 0x3c4   :  { %v326_v56 = vmul.f32 0.35355338, %v1071_v54  ;;  %v351_v57 = vsel %vm347_vm2, %v340_v53, -inf  ;;  %v339_v58 = vadd.f32 %v331_v51, %v323_v52 }
 0x3c5   :  { %352 = vmax.xlane.f32.xlu1 %v351_v57  ;;  %v294_v59 = vpop.f32.mrf.mxu1 }
 0x3c6   :  { %v325_v60 = vmul.f32 0.35355338, %v294_v59  ;;  %v348_v61 = vsel %vm347_vm2, %v339_v58, -inf  ;;  %v342_v62 = vadd.f32 %v334_v55, %v326_v56 }
 0x3c7   :  { %349 = vmax.xlane.f32.xlu0 %v348_v61  ;;  %v1074_v63 = vpop.f32.mrf.mxu1 }
 0x3c8   :  { %v328_v4 = vmul.f32 0.35355338, %v1074_v63  ;;  %v357_v7 = vsel %vm347_vm2, %v342_v62, -inf  ;;  %v341_v9 = vadd.f32 %v333_v3, %v325_v60 }
 0x3c9   :  { %v304_v5 = vpop.f32.mrf.mxu1 }
 0x3ca   :  { %v327_v6 = vmul.f32 0.35355338, %v304_v5  ;;  %v344_v8 = vadd.f32 %v336_v2, %v328_v4  ;;  %v354_v17 = vsel %vm347_vm2, %v341_v9, -inf }
 0x3cb   :  { %358 = vmax.xlane.f32.xlu0 %v357_v7  ;;  %v1077_v10 = vpop.f32.mrf.mxu1 }
 0x3cc   :  { %v330_v13 = vmul.f32 0.35355338, %v1077_v10  ;;  %v363_v14 = vsel %vm347_vm2, %v344_v8, -inf  ;;  %v343_v19 = vadd.f32 %v335_v12, %v327_v6 }
 0x3cd   :  { %364 = vmax.xlane.f32.xlu1 %v363_v14  ;;  %v314_v15 = vpop.f32.mrf.mxu1 }
 0x3ce   :  { %v329_v16 = vmul.f32 0.35355338, %v314_v15  ;;  %v346_v18 = vadd.f32 %v338_v11, %v330_v13  ;;  %v360_v22 = vsel %vm347_vm2, %v343_v19, -inf }
 0x3cf   :  { %355 = vmax.xlane.f32.xlu0 %v354_v17 }
 0x3d0   :  { %v369_v21 = vsel %vm347_vm2, %v346_v18, -inf  ;;  %v345_v23 = vadd.f32 %v337_v20, %v329_v16 }
 0x3d1   :  { %370 = vmax.xlane.f32.xlu1 %v369_v21 }
 0x3d2   :  { %v366_v24 = vsel %vm347_vm2, %v345_v23, -inf }
 0x3d3   :  { %361 = vmax.xlane.f32.xlu0 %v360_v22 }
 0x3d7   :  { %367 = vmax.xlane.f32.xlu0 %v366_v24 }
 0x3e2   :  { %448 = vrot.lane.b32.xlu1 %v1326_v33, %s1223_s18 }
 0x3e6   :  { %446 = vrot.lane.b32.xlu1 %v1332_v35, %s1223_s18 }
 0x3ea   :  { %444 = vrot.lane.b32.xlu1 %v1314_v30, %s1223_s18 }
 0x3ed   :  { %450 = vrot.lane.b32.xlu0 %v1328_v34, %s1223_s18 }
 0x3ee   :  { %440 = vrot.lane.b32.xlu1 %v1336_v36, %s1223_s18 }
 0x3f1   :  { %442 = vrot.lane.b32.xlu0 %v1338_v37, %s1223_s18 }
 0x44e   :  { %v353_v25 = vpop.xlane.xlu1 %352 }
 0x44f   :  { %v373_v26 = vsub.f32 %v340_v53, %v353_v25 }
 0x450   :  { %v350_v27 = vpop.xlane.xlu0 %349 }
 0x451   :  { %v382_v28 = vmul.f32 1.442695, %v373_v26  ;;  %v372_v29 = vsub.f32 %v339_v58, %v350_v27 }
 0x453   :  { %1161 = vpow2.f32 %v382_v28  ;;  %v380_v31 = vmul.f32 1.442695, %v372_v29 }
 0x454   :  { %v359_v33 = vpop.xlane.xlu0 %358 }
 0x455   :  { %1163 = vpow2.f32 %v380_v31  ;;  %v375_v35 = vsub.f32 %v342_v62, %v359_v33 }
 0x456   :  { %v365_v30 = vpop.xlane.xlu1 %364 }
 0x457   :  { %v386_v39 = vmul.f32 1.442695, %v375_v35  ;;  %v377_v40 = vsub.f32 %v344_v8, %v365_v30 }
 0x458   :  { %v356_v34 = vpop.xlane.xlu0 %355 }
 0x459   :  { %1165 = vpow2.f32 %v386_v39  ;;  %v390_v41 = vmul.f32 1.442695, %v377_v40  ;;  %v374_v36 = vsub.f32 %v341_v9, %v356_v34  ;;  %v624_v40 = vld [vmem:[%s1546_s4 + $0x18] sm:$0xff]  ;;  %v623_v34 = vld [vmem:[%s1546_s4 + $0x10] sm:$0xff] }
 0x45a   :  { %v371_v42 = vpop.xlane.xlu1 %370 }
 0x45b   :  { %1167 = vpow2.f32 %v390_v41  ;;  %v384_v37 = vmul.f32 1.442695, %v374_v36  ;;  %v379_v43 = vsub.f32 %v346_v18, %v371_v42  ;;  %v622_v41 = vld [vmem:[%s1546_s4 + $0x8] sm:$0xff]  ;;  %v621_v36 = vld [vmem:[%s1546_s4] sm:$0xff] }
 0x45c   :  { %v362_v44 = vpop.xlane.xlu0 %361 }
 0x45d   :  { %1169 = vpow2.f32 %v384_v37  ;;  %v394_v45 = vmul.f32 1.442695, %v379_v43  ;;  %v376_v46 = vsub.f32 %v343_v19, %v362_v44 }
 0x45e   :  { %v449_v47 = vpop.permute.xlu1 %448 }
 0x45f   :  { %1171 = vpow2.f32 %v394_v45  ;;  %v388_v48 = vmul.f32 1.442695, %v376_v46 }
 0x460   :  { %v1420_v49 = vpop.eup %1161  ;;  %v368_v50 = vpop.xlane.xlu0 %367 }
 0x461   :  { %1173 = vpow2.f32 %v388_v48  ;;  %v378_v51 = vsub.f32 %v345_v23, %v368_v50  ;;  %v399_v52 = vsel %vm347_vm2, %v1420_v49, 0.0 }
 0x462   :  { %v1164_v53 = vpop.eup %1163  ;;  %400 = vadd.xlane.f32.xlu1 %v399_v52  ;;  %v447_v55 = vpop.permute.xlu1 %446 }
 0x463   :  { %v392_v54 = vmul.f32 1.442695, %v378_v51  ;;  %v396_v56 = vsel %vm347_vm2, %v1164_v53, 0.0 }
 0x464   :  { %397 = vadd.xlane.f32.xlu0 %v396_v56  ;;  %v451_v57 = vpop.permute.xlu0 %450 }
 0x465   :  { %1175 = vpow2.f32 %v392_v54  ;;  %1078 = vmatprep.subr.mxu0 %v451_v57 }
 0x466   :  { %v1425_v58 = vpop.eup %1165  ;;  %1079 = vmatpush3.msra.mxu0 %v451_v57  ;;  %v445_v61 = vpop.permute.xlu1 %444 }
 0x467   :  { %1080 = vmatprep.subr.mxu0 %v449_v47  ;;  %v405_v59 = vsel %vm347_vm2, %v1425_v58, 0.0 }
 0x468   :  { %v1429_v60 = vpop.eup %1167  ;;  %406 = vadd.xlane.f32.xlu1 %v405_v59  ;;  %1081 = vmatpush3.msra.mxu0 %v449_v47  ;;  %v443_v4 = vpop.permute.xlu0 %442 }
 0x469   :  { %1082 = vmatprep.subr.mxu0 %v447_v55  ;;  %v411_v63 = vsel %vm347_vm2, %v1429_v60, 0.0 }
 0x46a   :  { %v1170_v62 = vpop.eup %1169  ;;  %1083 = vmatpush3.msra.mxu0 %v447_v55  ;;  %v441_v6 = vpop.permute.xlu1 %440 }
 0x46b   :  { %1084 = vmatprep.subr.mxu0 %v445_v61  ;;  %v402_v2 = vsel %vm347_vm2, %v1170_v62, 0.0 }
 0x46c   :  { %v1434_v3 = vpop.eup %1171  ;;  %412 = vadd.xlane.f32.xlu1 %v411_v63  ;;  %403 = vadd.xlane.f32.xlu0 %v402_v2 }
 0x46d   :  { %1085 = vmatpush3.msra.mxu0 %v445_v61  ;;  %v417_v7 = vsel %vm347_vm2, %v1434_v3, 0.0 }
 0x46e   :  { %v1174_v5 = vpop.eup %1173  ;;  %1086 = vmatprep.subr.mxu0 %v443_v4 }
 0x46f   :  { %1087 = vmatpush3.msra.mxu0 %v443_v4  ;;  %v408_v8 = vsel %vm347_vm2, %v1174_v5, 0.0 }
 0x470   :  { %1088 = vmatprep.subr.mxu0 %v441_v6  ;;  %418 = vadd.xlane.f32.xlu1 %v417_v7 }
 0x471   :  { %409 = vadd.xlane.f32.xlu0 %v408_v8  ;;  %1089 = vmatpush3.msra.mxu0 %v441_v6 }
 0x472   :  { %v1176_v9 = vpop.eup %1175 }
 0x473   :  { %v414_v10 = vsel %vm347_vm2, %v1176_v9, 0.0 }
 0x475   :  { %415 = vadd.xlane.f32.xlu0 %v414_v10 }
 0x481   :  { %436 = vrot.lane.b32.xlu1 %v1316_v32, %s1223_s18 }
 0x48b   :  { %438 = vrot.lane.b32.xlu0 %v1342_v38, %s1223_s18 }
 0x4eb   :  { %v401_v12 = vpop.xlane.xlu1 %400 }
 0x4ed   :  { %v398_v11 = vpop.xlane.xlu0 %397 }
 0x4ee   :  { %1177 = vrcp.f32 %v398_v11 }
 0x4ef   :  { %1179 = vrcp.f32 %v401_v12 }
 0x4f1   :  { %v407_v13 = vpop.xlane.xlu1 %406 }
 0x4f5   :  { %v404_v14 = vpop.xlane.xlu0 %403  ;;  %v413_v15 = vpop.xlane.xlu1 %412 }
 0x4f6   :  { %1181 = vrcp.f32 %v404_v14  ;;  %v736_v14 = vld [vmem:[%s1547_s5 + $0x10] sm:$0xff] }
 0x4f7   :  { %1183 = vrcp.f32 %v407_v13  ;;  %v737_v13 = vld [vmem:[%s1547_s5 + $0x18] sm:$0xff] }
 0x4f9   :  { %v419_v19 = vpop.xlane.xlu1 %418 }
 0x4fa   :  { %v410_v16 = vpop.xlane.xlu0 %409 }
 0x4fb   :  { %v1178_v17 = vpop.eup %1177  ;;  %1185 = vrcp.f32 %v410_v16  ;;  %v734_v16 = vld [vmem:[%s1547_s5] sm:$0xff] }
 0x4fc   :  { %v428_v18 = vmul.f32 %v1178_v17, %v1164_v53  ;;  %1187 = vrcp.f32 %v413_v15  ;;  %v1180_v32 = vpop.eup %1179  ;;  %v735_v15 = vld [vmem:[%s1547_s5 + $0x8] sm:$0xff]  ;;  %v835_v17 = vld [vmem:[%s1549_s7 + $0x38] sm:$0xff] }
 0x4fd   :  { %v437_v22 = vpop.permute.xlu1 %436  ;;  %v429_v23 = vmul.f32 %v1180_v32, %v1420_v49  ;;  %1128 = vmatprep.subr.mxu1 %v835_v17  ;;  %v831_v32 = vld [vmem:[%s1549_s7 + $0x18] sm:$0xff] }
 0x4fe   :  { %v416_v20 = vpop.xlane.xlu0 %415  ;;  %1094 = vmatprep.mubr.msk.f32.mxu0 %vm347_vm2, %v428_v18  ;;  %v834_v18 = vld [vmem:[%s1549_s7 + $0x30] sm:$0xff]  ;;  %1129 = vmatpush3.msra.mxu1 %v835_v17 }
 0x4ff   :  { %1189 = vrcp.f32 %v416_v20  ;;  %1130 = vmatprep.subr.mxu1 %v834_v18  ;;  %v832_v20 = vld [vmem:[%s1549_s7 + $0x20] sm:$0xff] }
 0x500   :  { %1191 = vrcp.f32 %v419_v19  ;;  %v833_v19 = vld [vmem:[%s1549_s7 + $0x28] sm:$0xff]  ;;  %1131 = vmatpush3.msra.mxu1 %v834_v18 }
 0x501   :  { %1132 = vmatprep.subr.mxu1 %v833_v19 }
 0x502   :  { %v439_v38 = vpop.permute.xlu0 %438  ;;  %1133 = vmatpush3.msra.mxu1 %v833_v19 }
 0x503   :  { %1090 = vmatprep.subr.mxu0 %v439_v38  ;;  %v1182_v21 = vpop.eup %1181  ;;  %1134 = vmatprep.subr.mxu1 %v832_v20 }
 0x504   :  { %1091 = vmatpush3.msra.mxu0 %v439_v38  ;;  %v430_v24 = vmul.f32 %v1182_v21, %v1170_v62  ;;  %v1184_v25 = vpop.eup %1183  ;;  %1135 = vmatpush3.msra.mxu1 %v832_v20 }
 0x505   :  { %1092 = vmatprep.subr.mxu0 %v437_v22  ;;  %v431_v27 = vmul.f32 %v1184_v25, %v1425_v58  ;;  %1136 = vmatprep.subr.mxu1 %v831_v32 }
 0x506   :  { %1093 = vmatpush3.msra.mxu0 %v437_v22  ;;  %1137 = vmatpush3.msra.mxu1 %v831_v32 }
 0x507   :  { %1095 = vmatmul.mubr.msk.f32.vlgmr.msra.gmra.mxu0 %vm347_vm2, %v429_v23  ;;  %1106 = vmatprep.subr.mxu0 %v624_v40 }
 0x508   :  { %v1186_v26 = vpop.eup %1185  ;;  %1097 = vmatprep.mubr.msk.f32.mxu0 %vm347_vm2, %v430_v24  ;;  %1107 = vmatpush3.msra.mxu0 %v624_v40 }
 0x509   :  { %v432_v28 = vmul.f32 %v1186_v26, %v1174_v5  ;;  %v1188_v29 = vpop.eup %1187  ;;  %1108 = vmatprep.subr.mxu0 %v623_v34 }
 0x50a   :  { %v433_v33 = vmul.f32 %v1188_v29, %v1429_v60  ;;  %1109 = vmatpush3.msra.mxu0 %v623_v34 }
 0x50b   :  { %1098 = vmatmul.mubr.msk.f32.gmra.mxu0 %vm347_vm2, %v431_v27  ;;  %1110 = vmatprep.subr.mxu0 %v622_v41 }
 0x50c   :  { %v1190_v31 = vpop.eup %1189  ;;  %1100 = vmatprep.mubr.msk.f32.mxu0 %vm347_vm2, %v432_v28  ;;  %1111 = vmatpush3.msra.mxu0 %v622_v41 }
 0x50d   :  { %v434_v35 = vmul.f32 %v1190_v31, %v1176_v9  ;;  %v1192_v30 = vpop.eup %1191  ;;  %1112 = vmatprep.subr.mxu0 %v621_v36  ;;  %v830_v31 = vld [vmem:[%s1549_s7 + $0x10] sm:$0xff] }
 0x50e   :  { %v435_v39 = vmul.f32 %v1192_v30, %v1434_v3  ;;  %1113 = vmatpush3.msra.mxu0 %v621_v36  ;;  %1138 = vmatprep.subr.mxu1 %v830_v31  ;;  %v973_v30 = vld [vmem:[%s1548_s6] ss:$0 sm:$0xff] }
 0x50f   :  { %1101 = vmatmul.mubr.msk.f32.gmra.mxu0 %vm347_vm2, %v433_v33  ;;  %1117 = vmatprep.subr.mxu0 %v737_v13  ;;  %v829_v33 = vld [vmem:[%s1549_s7 + $0x8] sm:$0xff] }
 0x510   :  { %1103 = vmatprep.mubr.msk.f32.mxu0 %vm347_vm2, %v434_v35  ;;  %1139 = vmatpush3.msra.mxu1 %v830_v31  ;;  %v828_v35 = vld [vmem:[%s1549_s7] sm:$0xff]  ;;  %s1227_s7 = smov [#allocation2]  }
 0x511   :  { %1140 = vmatprep.subr.mxu1 %v829_v33  ;;  %s933_s28 = sshll.u32 %s1227_s7, 4  ;;  %s934_s28 = int_to_ptr.vmem [resolvable:$true] %s933_s28 }
 0x512   :  { %1141 = vmatpush3.msra.mxu1 %v829_v33  ;;  %s1197_s6 = scalar_lea.vmem %s934_s28, 256  ;;  %p1202_p1 = scmp.lt.s32.totalorder %s934_s28, %s934_s28 }
 0x513   :  { %1104 = vmatmul.mubr.msk.f32.gmra.mxu0 %vm347_vm2, %v435_v39  ;;  %1142 = vmatprep.subr.mxu1 %v828_v35  ;;  %p1198_p0 = scmp.ne.s32.totalorder %s934_s28, %s1197_s6  ;;  %p1203_p2 = scmp.lt.s32.totalorder %s1197_s6, %s1197_s6 }
 0x514   :  { %1143 = vmatpush3.msra.mxu1 %v828_v35 }
 0x515   :  { %p1204_p3 = por %p1203_p2, %p1202_p1 }
 0x517   :  { %p1205_p4 = pnand %p1204_p3, %p1198_p0 }
 0x5c7   :  { %v1096_v42 = vpop.f32.mrf.mxu0 }
 0x5c8   :  { %590 = vrot.lane.b32.xlu0 %v1096_v42, %s1224_s24 }
 0x5c9   :  { %v550_v37 = vpop.f32.mrf.mxu0 }
 0x5cb   :  { %v1099_v43 = vpop.f32.mrf.mxu0 }
 0x5cc   :  { %598 = vrot.lane.b32.xlu1 %v1099_v43, %s1225_s25 }
 0x5cd   :  { %v560_v44 = vpop.f32.mrf.mxu0 }
 0x5cf   :  { %v1102_v45 = vpop.f32.mrf.mxu0 }
 0x5d0   :  { %594 = vrot.lane.b32.xlu1 %v560_v44, %s1226_s26  ;;  %607 = vrot.lane.b32.xlu0 %v1102_v45, %s1224_s24 }
 0x5d1   :  { %v570_v46 = vpop.f32.mrf.mxu0 }
 0x5d3   :  { %v1105_v47 = vpop.f32.mrf.mxu0 }
 0x5d4   :  { %615 = vrot.lane.b32.xlu1 %v1105_v47, %s1225_s25 }
 0x5d5   :  { %v580_v48 = vpop.f32.mrf.mxu0 }
 0x5d6   :  { %611 = vrot.lane.b32.xlu0 %v580_v48, %s1226_s26 }
 0x63a   :  { %v591_v50 = vpop.permute.xlu0 %590 }
 0x63b   :  { %v601_v51 = vsel %vm185_vm1, %v550_v37, %v591_v50  ;;  %v976_v37 = vld [vmem:[%s1550_s8] ss:$0 sm:$0xff] }
 0x63e   :  { %v599_v49 = vpop.permute.xlu1 %598 }
 0x642   :  { %v595_v52 = vpop.permute.xlu1 %594  ;;  %v608_v54 = vpop.permute.xlu0 %607 }
 0x643   :  { %v603_v53 = vsel %vm602_vm3, %v601_v51, %v595_v52  ;;  %v618_v56 = vsel %vm185_vm1, %v570_v46, %v608_v54 }
 0x644   :  { %v605_v55 = vsel %vm604_vm4, %v603_v53, %v599_v49 }
 0x645   :  { %1114 = vmatprep.mubr.msk.f32.mxu0 %vm35_vm0, %v605_v55 }
 0x646   :  { %v616_v58 = vpop.permute.xlu1 %615 }
 0x648   :  { %v612_v57 = vpop.permute.xlu0 %611 }
 0x649   :  { %v619_v59 = vsel %vm602_vm3, %v618_v56, %v612_v57 }
 0x64a   :  { %v620_v60 = vsel %vm604_vm4, %v619_v59, %v616_v58 }
 0x64b   :  { %1115 = vmatmul.mubr.msk.f32.vlgmr.msra.gmra.mxu0 %vm35_vm0, %v620_v60 }
 0x64c   :  { %1118 = vmatpush3.msra.mxu0 %v737_v13 }
 0x64d   :  { %1119 = vmatprep.subr.mxu0 %v736_v14 }
 0x64e   :  { %1120 = vmatpush3.msra.mxu0 %v736_v14 }
 0x64f   :  { %1121 = vmatprep.subr.mxu0 %v735_v15 }
 0x650   :  { %1122 = vmatpush3.msra.mxu0 %v735_v15 }
 0x651   :  { %1123 = vmatprep.subr.mxu0 %v734_v16 }
 0x652   :  { %1124 = vmatpush3.msra.mxu0 %v734_v16 }
 0x70b   :  { %v1116_v61 = vpop.f32.mrf.mxu0 }
 0x70c   :  { %v1475_v62 = vadd.f32 %v1116_v61, %v1287_v1 }
 0x70d   :  { %v697_v63 = vpop.f32.mrf.mxu0 }
 0x70e   :  { %v1478_v2 = vadd.f32 %v697_v63, %v1282_v0  ;;  %v711_v3 = vsel %vm35_vm0, %v1475_v62, 0.0 }
 0x70f   :  { %712 = vadd.xlane.f32.xlu1 %v711_v3 }
 0x710   :  { %v708_v4 = vsel %vm35_vm0, %v1478_v2, 0.0 }
 0x711   :  { %709 = vadd.xlane.f32.xlu0 %v708_v4 }
 0x798   :  { %v713_v5 = vpop.xlane.xlu1 %712 }
 0x799   :  { %v715_v6 = vmul.f32 0.03125, %v713_v5 }
 0x79a   :  { %v710_v7 = vpop.xlane.xlu0 %709 }
 0x79b   :  { %v714_v8 = vmul.f32 0.03125, %v710_v7  ;;  %v717_v9 = vsub.f32 %v1475_v62, %v715_v6 }
 0x79d   :  { %v716_v1 = vsub.f32 %v1478_v2, %v714_v8  ;;  %v719_v11 = vmul.f32 %v717_v9, %v717_v9 }
 0x79f   :  { %v718_v10 = vmul.f32 %v716_v1, %v716_v1  ;;  %v723_v12 = vsel %vm35_vm0, %v719_v11, 0.0 }
 0x7a1   :  { %v720_v0 = vsel %vm35_vm0, %v718_v10, 0.0 }
 0x7a2   :  { %721 = vadd.xlane.f32.xlu0 %v720_v0 }
 0x7a6   :  { %724 = vadd.xlane.f32.xlu0 %v723_v12 }
 0x82b   :  { %v722_v38 = vpop.xlane.xlu0 %721 }
 0x82c   :  { %v726_v21 = vmul.f32 0.03125, %v722_v38 }
 0x82e   :  { %v728_v22 = vadd.f32 1e-05, %v726_v21 }
 0x82f   :  { %v725_v23 = vpop.xlane.xlu0 %724 }
 0x830   :  { %1193 = vrsqrt.f32 %v728_v22  ;;  %v727_v24 = vmul.f32 0.03125, %v725_v23 }
 0x832   :  { %v729_v25 = vadd.f32 1e-05, %v727_v24 }
 0x834   :  { %1195 = vrsqrt.f32 %v729_v25 }
 0x83d   :  { %v1194_v26 = vpop.eup %1193 }
 0x83e   :  { %v732_v27 = vmul.f32 %v1194_v26, %v716_v1 }
 0x840   :  { %1125 = vmatprep.mubr.msk.f32.mxu0 %vm35_vm0, %v732_v27 }
 0x841   :  { %v1196_v28 = vpop.eup %1195 }
 0x842   :  { %v733_v29 = vmul.f32 %v1196_v28, %v717_v9 }
 0x844   :  { %1126 = vmatmul.mubr.msk.f32.vlgmr.msra.gmra.mxu0 %vm35_vm0, %v733_v29 }
 0x904   :  { %v1127_v39 = vpop.f32.mrf.mxu0 }
 0x905   :  { %v823_v40 = vadd.f32 %v1127_v39, %v973_v30 }
 0x906   :  { %v817_v34 = vpop.f32.mrf.mxu0 }
 0x907   :  { %v818_v41 = vadd.f32 %v973_v30, %v817_v34  ;;  %v827_v42 = vmax.f32 %v823_v40, 0.0 }
 0x909   :  { %v826_v36 = vmax.f32 %v818_v41, 0.0 }
 0x90b   :  { %1144 = vmatprep.mubr.msk.f32.mxu1 %vm347_vm2, %v826_v36 }
 0x90c   :  { %1145 = vmatmul.mubr.msk.f32.vlgmr.msra.gmra.mxu1 %vm347_vm2, %v827_v42 }
 0x9cc   :  { %v1146_v43 = vpop.f32.mrf.mxu1 }
 0x9cd   :  { %v921_v44 = vadd.f32 %v1146_v43, %v976_v37 }
 0x9ce   :  { %v915_v45 = vpop.f32.mrf.mxu1 }
 0x9cf   :  { %v925_v46 = vadd.f32 %v921_v44, %v1475_v62  ;;  %v916_v47 = vadd.f32 %v976_v37, %v915_v45 }
 0x9d1   :  { %927 = vst.msk [vmem:[#allocation2 + $0x8] sm:$0xff] %vm35_vm0, %v925_v46  ;;  %v924_v48 = vadd.f32 %v916_v47, %v1478_v2 }
 0x9d3   :  { %926 = vst.msk [vmem:[#allocation2] sm:$0xff] %vm35_vm0, %v924_v48 }
 0x9d4   :  { %1208 = shalt.err (!%p1205_p4)
}
 0x9d5   :  { %s1228_s8 = smov 128  }
 0x9d6   :  { %939 = dma.vmem_to_hbm [thread:$0]  %s934_s28, 256, %s1551_s9, [#allocation3], %s1228_s8, %s1228_s8, %s1224_s24  }
 0x9d7   :  { %1217 = dma.done.wait [#allocation3], 256  }
 0x9d8   :  { %1218 = vsyncadd [#allocation3], 4294967040 }
 0x9d9   :  { %943 = vsyncpa [#allocation3], 1 }

</bundles_post_ra>
